<compile_context>
chip_gen: v7x
topology: tpu7x:2x2x1
jax: 0.10.0
libtpu: 0.0.40
codegen_flags: <defaults>
</compile_context>

<pallas_src>
import math

import jax
import jax.numpy as jnp
from jax import lax
from jax.experimental import pallas as pl
from jax.experimental.pallas import tpu as pltpu


# ---------------------------------------------------------------------------
# Config -> BEV parameters (mirrors calculate_birds_eye_view_parameters)
# ---------------------------------------------------------------------------
def calculate_birds_eye_view_parameters(x_bounds, y_bounds, z_bounds):
    rows = [x_bounds, y_bounds, z_bounds]
    bev_resolution = [float(r[2]) for r in rows]
    bev_start_position = [float(r[0]) + float(r[2]) / 2.0 for r in rows]
    # torch casts (upper - lower) / step to long -> truncation
    bev_dimension = [int((float(r[1]) - float(r[0])) / float(r[2])) for r in rows]
    return bev_resolution, bev_start_position, bev_dimension


def _round_up(v, m):
    return ((v + m - 1) // m) * m


def _interp_weight_matrix(coords, size):
    """Row l holds the bilinear weights for sampling position coords[l] over an
    axis of length `size` (zero weight for out-of-range corners == zeros pad)."""
    c0 = jnp.floor(coords)
    frac = coords - c0
    c0i = c0.astype(jnp.int32)
    c1i = c0i + 1
    idx = jnp.arange(size, dtype=jnp.int32)[None, :]
    in0 = ((c0i >= 0) & (c0i < size)).astype(jnp.float32)[:, None]
    in1 = ((c1i >= 0) & (c1i < size)).astype(jnp.float32)[:, None]
    w = ((idx == c0i[:, None]).astype(jnp.float32) * (1.0 - frac)[:, None] * in0
         + (idx == c1i[:, None]).astype(jnp.float32) * frac[:, None] * in1)
    return w.astype(jnp.float32)


# ---------------------------------------------------------------------------
# Pallas kernel.
#   x_ref : (TB, H_in, W_in)       activations (input dtype, natural layout)
#   at_ref: (W_in, H_out_p)        width-interp weights, transposed + H_out pad
#   bt_ref: (H_in, W_out_eff)      height-interp weights, transposed, f32
#   o_ref : (TB, H_out, W_out_eff) output block
#   p_ref : (TB, H_in, H_out_p)    f32 intermediate scratch (VMEM)
# ---------------------------------------------------------------------------
def _slicer_kernel(x_ref, at_ref, bt_ref, o_ref, p_ref):
    tb, h_in, w_in = x_ref.shape
    h_out = o_ref.shape[1]
    h_out_p = at_ref.shape[1]

    # Stage 1, batched across all TB slices: one MXU matmul, M = tb * h_in.
    xm = x_ref[...].reshape(tb * h_in, w_in)
    p = jnp.dot(xm, at_ref[...], preferred_element_type=jnp.float32)
    p_ref[...] = p.reshape(tb, h_in, h_out_p)

    bt = bt_ref[...]                                        # (h_in, w_out_eff) f32

    # Stage 2: per-slice transposed-LHS matmul; fori_loop bounds live ranges.
    def body(b, carry):
        pb = p_ref[b]                                       # (h_in, h_out_p) f32
        ob = lax.dot_general(pb, bt, (((0,), (0,)), ((), ())),
                             preferred_element_type=jnp.float32)
        o_ref[b] = ob[:h_out].astype(o_ref.dtype)
        return carry

    lax.fori_loop(0, tb, body, 0, unroll=min(4, tb))


class BevFeatureSlicer:
    _MAX_TB = 128

    def __init__(self, grid_conf, map_grid_conf):
        if grid_conf == map_grid_conf:
            self.identity_mapping = True
            return
        self.identity_mapping = False

        map_res, map_start, _ = calculate_birds_eye_view_parameters(
            map_grid_conf['xbound'], map_grid_conf['ybound'],
            map_grid_conf['zbound'])

        # torch.arange(start, stop, step): count = ceil((stop - start) / step)
        def _arange(start, stop, step):
            n = int(math.ceil((stop - start) / step))
            return start + step * jnp.arange(n, dtype=jnp.float32), n

        self.map_x, nx = _arange(map_start[0], float(map_grid_conf['xbound'][1]),
                                 map_res[0])
        self.map_y, ny = _arange(map_start[1], float(map_grid_conf['ybound'][1]),
                                 map_res[1])

        norm_range_x = float(grid_conf['x'][1]) - float(grid_conf['x'][2]) / 2.0
        norm_range_y = float(grid_conf['y'][1]) - float(grid_conf['y'][2]) / 2.0
        self.norm_map_x = self.map_x / jnp.float32(norm_range_x)   # length nx
        self.norm_map_y = self.map_y / jnp.float32(norm_range_y)   # length ny

        # map_grid[i, j] = (norm_map_y[i], norm_map_x[j])  (torch.meshgrid 'ij')
        gy, gx = jnp.meshgrid(self.norm_map_y, self.norm_map_x, indexing='ij')
        self.map_grid = jnp.stack([gy, gx], axis=2)        # (H_out, W_out, 2)
        self.h_out = ny
        self.w_out = nx

        # Generation-aware VMEM budgeting (v5e/v6e: 128 MiB, v7x: 64 MiB/TC).
        cap = 0
        try:
            cap = int(pltpu.get_tpu_info().vmem_capacity_bytes)
        except Exception:
            cap = 0
        self._vmem_cap = cap if cap > 0 else 64 * 1024 * 1024
        self._weight_cache = {}

    # -- cached interpolation weights (transposed, padded) --------------------
    def _weights(self, h_in, w_in, adtype):
        key = (h_in, w_in, jnp.dtype(adtype).name)
        hit = self._weight_cache.get(key)
        if hit is not None:
            return hit
        # grid channel 0 (norm_map_y, varies with output row i) samples width;
        # channel 1 (norm_map_x, varies with output col j) samples height.
        ix = (self.norm_map_y + 1.0) * 0.5 * (w_in - 1)    # (H_out,)
        iy = (self.norm_map_x + 1.0) * 0.5 * (h_in - 1)    # (W_out,)
        a = _interp_weight_matrix(ix, w_in)                # (H_out, W_in)
        b = _interp_weight_matrix(iy, h_in)                # (W_out, H_in)

        h_out_p = _round_up(self.h_out, 8)                 # sublane-aligned interm.
        # lane-pad the output width only when it is below one vreg lane width;
        # otherwise store the exact width (no wrapper-side unpad HBM pass).
        w_out_eff = _round_up(self.w_out, 128) if self.w_out < 128 else self.w_out

        a_t = jnp.zeros((w_in, h_out_p), jnp.float32)
        a_t = a_t.at[:, :self.h_out].set(a.T).astype(adtype)      # (W_in, H_out_p)
        b_t = jnp.zeros((h_in, w_out_eff), jnp.float32)
        b_t = b_t.at[:, :self.w_out].set(b.T)                     # f32, stays f32

        res = (a_t, b_t, h_out_p, w_out_eff)
        self._weight_cache[key] = res
        return res

    # -- choose slices-per-grid-step ------------------------------------------
    def _pick_tb(self, nc, h_in, w_in, h_out_p, w_out_eff, dsize, a_size):
        stream_budget = self._vmem_cap // 4          # ~32 MiB on 128 MiB parts, 16 on v7x
        # resident weights (double-buffered by the pipeline) ...
        fixed = 2 * (w_in * h_out_p * a_size + h_in * w_out_eff * 4)
        # ... plus per-slice: double-buffered in/out blocks + f32 scratch.
        per_slice = (2 * (h_in * w_in + self.h_out * w_out_eff) * dsize
                     + h_in * h_out_p * 4)
        cap = max(1, (stream_budget - fixed) // max(per_slice, 1))
        cap = min(cap, self._MAX_TB, nc)
        if nc >= 4:
            cap = min(cap, max(1, nc // 4))   # >= 2 grid steps per TC (v7x: 2 TCs)
        elif nc >= 2:
            cap = min(cap, nc // 2)
        return max(1, int(cap))

    def __call__(self, x):
        if self.identity_mapping:
            return x
        n, c, h_in, w_in = x.shape
        h_out, w_out = self.h_out, self.w_out

        adtype = jnp.bfloat16 if x.dtype == jnp.bfloat16 else jnp.float32
        a_t, b_t, h_out_p, w_out_eff = self._weights(h_in, w_in, adtype)

        nc = n * c
        dsize = jnp.dtype(x.dtype).itemsize
        tb = self._pick_tb(nc, h_in, w_in, h_out_p, w_out_eff, dsize,
                           jnp.dtype(adtype).itemsize)
        n_blocks = pl.cdiv(nc, tb)
        x_flat = x.reshape(nc, h_in, w_in)

        flops = 2 * nc * (h_in * w_in * h_out_p + h_in * h_out_p * w_out_eff)
        bytes_accessed = (nc * h_in * w_in * dsize
                          + nc * h_out * w_out_eff * dsize
                          + a_t.size * a_t.dtype.itemsize
                          + b_t.size * b_t.dtype.itemsize)

        # TODO(synk): mark the constant weight inputs single-buffered
        # (pipeline_mode=pl.Buffered(1)) once verified on the target jax build.
        out_pad = pl.pallas_call(
            _slicer_kernel,
            out_shape=jax.ShapeDtypeStruct((nc, h_out, w_out_eff), x.dtype),
            grid_spec=pltpu.PrefetchScalarGridSpec(
                num_scalar_prefetch=0,
                grid=(n_blocks,),
                in_specs=[
                    pl.BlockSpec((tb, h_in, w_in), lambda i: (i, 0, 0)),
                    pl.BlockSpec((w_in, h_out_p), lambda i: (0, 0)),
                    pl.BlockSpec((h_in, w_out_eff), lambda i: (0, 0)),
                ],
                out_specs=pl.BlockSpec((tb, h_out, w_out_eff),
                                       lambda i: (i, 0, 0)),
                scratch_shapes=[pltpu.VMEM((tb, h_in, h_out_p), jnp.float32)],
            ),
            compiler_params=pltpu.CompilerParams(
                dimension_semantics=("parallel",),
                vmem_limit_bytes=int(self._vmem_cap * 3 // 4),
            ),
            cost_estimate=pl.CostEstimate(
                flops=flops, transcendentals=0, bytes_accessed=bytes_accessed),
        )(x_flat, a_t, b_t)

        out = out_pad[..., :w_out] if w_out_eff != w_out else out_pad
        return out.reshape(n, c, h_out, w_out)


# ---------------------------------------------------------------------------
# Plain-JAX reference grid_sample (bilinear, align_corners=True, zeros pad)
# ---------------------------------------------------------------------------
def grid_sample_ref(x, grid):
    n, c, h, w = x.shape
    gx = grid[..., 0]
    gy = grid[..., 1]
    ix = (gx + 1.0) * 0.5 * (w - 1)
    iy = (gy + 1.0) * 0.5 * (h - 1)
    x0 = jnp.floor(ix)
    y0 = jnp.floor(iy)
    x1 = x0 + 1
    y1 = y0 + 1
    wx1 = ix - x0
    wx0 = 1.0 - wx1
    wy1 = iy - y0
    wy0 = 1.0 - wy1

    ni = jnp.arange(n)[:, None, None, None]
    ci = jnp.arange(c)[None, :, None, None]

    def gather(xc, yc):
        valid = ((xc >= 0) & (xc <= w - 1) & (yc >= 0) & (yc <= h - 1))
        xi = jnp.clip(xc, 0, w - 1).astype(jnp.int32)[:, None, :, :]
        yi = jnp.clip(yc, 0, h - 1).astype(jnp.int32)[:, None, :, :]
        v = x[ni, ci, yi, xi]
        return v * valid.astype(x.dtype)[:, None, :, :]

    return (gather(x0, y0) * (wx0 * wy0)[:, None]
            + gather(x1, y0) * (wx1 * wy0)[:, None]
            + gather(x0, y1) * (wx0 * wy1)[:, None]
            + gather(x1, y1) * (wx1 * wy1)[:, None])


if __name__ == "__main__":
    # Source BEV grid: 16x16 cells; target map grid: 8x8 cells.
    grid_conf = {'x': [-16.0, 16.0, 2.0],
                 'y': [-16.0, 16.0, 2.0],
                 'z': [-10.0, 10.0, 20.0]}
    map_grid_conf = {'xbound': [-8.0, 8.0, 2.0],
                     'ybound': [-8.0, 8.0, 2.0],
                     'zbound': [-10.0, 10.0, 20.0]}

    slicer = BevFeatureSlicer(grid_conf, map_grid_conf)

    key = jax.random.PRNGKey(0)
    x = jax.random.normal(key, (2, 4, 16, 16), dtype=jnp.float32)  # NCHW
    out = jax.block_until_ready(slicer(x))

    n = x.shape[0]
    grid = jnp.broadcast_to(slicer.map_grid[None], (n,) + slicer.map_grid.shape)
    ref = grid_sample_ref(x, grid)
    assert out.shape == (2, 4, 8, 8), out.shape
    assert jnp.allclose(out, ref, atol=1e-4, rtol=1e-4)

    # Ragged case: n*c = 9 is not divisible by the chosen TB -> exercises the
    # cdiv grid + masked trailing block path.
    x2 = jax.random.normal(jax.random.PRNGKey(1), (1, 9, 16, 16),
                           dtype=jnp.float32)
    out2 = jax.block_until_ready(slicer(x2))
    grid2 = jnp.broadcast_to(slicer.map_grid[None], (1,) + slicer.map_grid.shape)
    ref2 = grid_sample_ref(x2, grid2)
    assert out2.shape == (1, 9, 8, 8), out2.shape
    assert jnp.allclose(out2, ref2, atol=1e-4, rtol=1e-4)

    # Identity-mapping path (grid_conf == map_grid_conf) returns x unchanged.
    ident = BevFeatureSlicer(grid_conf, grid_conf)
    assert ident(x) is x

    print("KERNEL_OK")
</pallas_src>

<mosaic_0001>
module attributes {stable_mosaic.version = 11 : i64} {
  func.func @_slicer_kernel(%arg0: i32, %arg1: memref<2x16x16xf32, #tpu.memory_space<vmem>>, %arg2: memref<16x8xf32, #tpu.memory_space<vmem>>, %arg3: memref<16x128xf32, #tpu.memory_space<vmem>>, %arg4: memref<2x8x128xf32, #tpu.memory_space<vmem>>, %arg5: memref<2x16x8xf32, #tpu.memory_space<vmem>>) attributes {dimension_semantics = [#tpu.dimension_semantics<parallel>], iteration_bounds = array<i64: 4>, scalar_prefetch = 0 : i64, scratch_operands = 1 : i64, tpu.core_type = #tpu.core_type<tc>, window_params = [{transform_indices = @transform_0, window_bounds = array<i64: 2, 16, 16>}, {pipeline_mode = #tpu.pipeline_mode<synchronous>, transform_indices = @transform_1, window_bounds = array<i64: 16, 8>}, {pipeline_mode = #tpu.pipeline_mode<synchronous>, transform_indices = @transform_2, window_bounds = array<i64: 16, 128>}, {transform_indices = @transform_3, window_bounds = array<i64: 2, 8, 128>}]} {
    %c0 = arith.constant 0 : index
    %c0_0 = arith.constant 0 : index
    %c0_1 = arith.constant 0 : index
    %0 = vector.load %arg1[%c0, %c0_0, %c0_1] : memref<2x16x16xf32, #tpu.memory_space<vmem>>, vector<2x16x16xf32>
    %1 = vector.shape_cast %0 : vector<2x16x16xf32> to vector<32x16xf32>
    %c0_2 = arith.constant 0 : index
    %c0_3 = arith.constant 0 : index
    %2 = vector.load %arg2[%c0_2, %c0_3] : memref<16x8xf32, #tpu.memory_space<vmem>>, vector<16x8xf32>
    %cst = arith.constant dense<0.000000e+00> : vector<32x8xf32>
    %3 = tpu.matmul %1, %2, %cst {dimension_numbers = #tpu.dot_dimension_numbers<[1], [0], [0], [1], [0, 0, 1, 1], [], []>} : vector<32x16xf32>, vector<16x8xf32>, vector<32x8xf32> -> vector<32x8xf32>
    %4 = vector.shape_cast %3 : vector<32x8xf32> to vector<2x16x8xf32>
    %c0_4 = arith.constant 0 : index
    %c0_5 = arith.constant 0 : index
    %c0_6 = arith.constant 0 : index
    %5 = vector.load %arg5[%c0_4, %c0_5, %c0_6] : memref<2x16x8xf32, #tpu.memory_space<vmem>>, vector<2x16x8xf32>
    tpu.vector_store %arg5[%c0_4, %c0_5, %c0_6], %4 {strides = array<i32>} : memref<2x16x8xf32, #tpu.memory_space<vmem>>, vector<2x16x8xf32>,
    %c0_7 = arith.constant 0 : index
    %c0_8 = arith.constant 0 : index
    %6 = vector.load %arg3[%c0_7, %c0_8] : memref<16x128xf32, #tpu.memory_space<vmem>>, vector<16x128xf32>
    %c0_i32 = arith.constant 0 : i32
    %7 = arith.index_cast %c0_i32 : i32 to index
    %c0_9 = arith.constant 0 : index
    %c0_10 = arith.constant 0 : index
    %8 = vector.load %arg5[%7, %c0_9, %c0_10] : memref<2x16x8xf32, #tpu.memory_space<vmem>>, vector<1x16x8xf32>
    %9 = vector.shape_cast %8 : vector<1x16x8xf32> to vector<16x8xf32>
    %cst_11 = arith.constant dense<0.000000e+00> : vector<8x128xf32>
    %10 = tpu.matmul %9, %6, %cst_11 {dimension_numbers = #tpu.dot_dimension_numbers<[0], [0], [1], [1], [0, 1, 1, 1], [], []>} : vector<16x8xf32>, vector<16x128xf32>, vector<8x128xf32> -> vector<8x128xf32>
    %11 = arith.index_cast %c0_i32 : i32 to index
    %c0_12 = arith.constant 0 : index
    %c0_13 = arith.constant 0 : index
    %12 = vector.load %arg4[%11, %c0_12, %c0_13] : memref<2x8x128xf32, #tpu.memory_space<vmem>>, vector<1x8x128xf32>
    %13 = vector.shape_cast %12 : vector<1x8x128xf32> to vector<8x128xf32>
    %14 = vector.shape_cast %10 : vector<8x128xf32> to vector<1x8x128xf32>
    tpu.vector_store %arg4[%11, %c0_12, %c0_13], %14 {strides = array<i32>} : memref<2x8x128xf32, #tpu.memory_space<vmem>>, vector<1x8x128xf32>,
    %c1_i32 = arith.constant 1 : i32
    %15 = arith.index_cast %c1_i32 : i32 to index
    %c0_14 = arith.constant 0 : index
    %c0_15 = arith.constant 0 : index
    %16 = vector.load %arg5[%15, %c0_14, %c0_15] : memref<2x16x8xf32, #tpu.memory_space<vmem>>, vector<1x16x8xf32>
    %17 = vector.shape_cast %16 : vector<1x16x8xf32> to vector<16x8xf32>
    %cst_16 = arith.constant dense<0.000000e+00> : vector<8x128xf32>
    %18 = tpu.matmul %17, %6, %cst_16 {dimension_numbers = #tpu.dot_dimension_numbers<[0], [0], [1], [1], [0, 1, 1, 1], [], []>} : vector<16x8xf32>, vector<16x128xf32>, vector<8x128xf32> -> vector<8x128xf32>
    %19 = arith.index_cast %c1_i32 : i32 to index
    %c0_17 = arith.constant 0 : index
    %c0_18 = arith.constant 0 : index
    %20 = vector.load %arg4[%19, %c0_17, %c0_18] : memref<2x8x128xf32, #tpu.memory_space<vmem>>, vector<1x8x128xf32>
    %21 = vector.shape_cast %20 : vector<1x8x128xf32> to vector<8x128xf32>
    %22 = vector.shape_cast %18 : vector<8x128xf32> to vector<1x8x128xf32>
    tpu.vector_store %arg4[%19, %c0_17, %c0_18], %22 {strides = array<i32>} : memref<2x8x128xf32, #tpu.memory_space<vmem>>, vector<1x8x128xf32>,
    %c2_i32 = arith.constant 2 : i32
    return
  }
  func.func @transform_0(%arg0: i32) -> (i32, i32, i32) {
    %c0_i32 = arith.constant 0 : i32
    %c0_i32_0 = arith.constant 0 : i32
    %c0_i32_1 = arith.constant 0 : i32
    return %arg0, %c0_i32, %c0_i32_0 : i32, i32, i32
  }
  func.func @transform_1(%arg0: i32) -> (i32, i32) {
    %c0_i32 = arith.constant 0 : i32
    %c0_i32_0 = arith.constant 0 : i32
    %c0_i32_1 = arith.constant 0 : i32
    return %c0_i32, %c0_i32_0 : i32, i32
  }
  func.func @transform_2(%arg0: i32) -> (i32, i32) {
    %c0_i32 = arith.constant 0 : i32
    %c0_i32_0 = arith.constant 0 : i32
    %c0_i32_1 = arith.constant 0 : i32
    return %c0_i32, %c0_i32_0 : i32, i32
  }
  func.func @transform_3(%arg0: i32) -> (i32, i32, i32) {
    %c0_i32 = arith.constant 0 : i32
    %c0_i32_0 = arith.constant 0 : i32
    %c0_i32_1 = arith.constant 0 : i32
    return %arg0, %c0_i32, %c0_i32_0 : i32, i32, i32
  }
}

</mosaic_0001>

<bundles_post_ra>
// kernel: tpu_custom_call.1
= control target key start
LH: loop header
LB: loop body
LE: loop exit
PB: predicated region body
PF: predicated region fallthrough
CT: control target
= control target key end

     0   :  { %8 = vsyncpa [#allocation4], 0  ;;  %s1040_s0 = inlined_call_operand.hbm [shape: f32[8,16,16], index: 0, kind: input, shape index: {}]   ;;  %s1041_s1 = inlined_call_operand.vmem [shape: f32[16,8], index: 1, kind: input, shape index: {}]   ;;  %s1042_s2 = inlined_call_operand.vmem [shape: f32[16,128], index: 2, kind: input, shape index: {}]   ;;  %s1043_s3 = inlined_call_operand.hbm [shape: f32[8,8,128], index: 3, kind: output, shape index: {}]  }
   0x1   :  { %10 = vsyncpa [#allocation4 + $0x1], 0 }
   0x2   :  { %11 = vsyncpa [#allocation5], 0 }
   0x3   :  { %13 = vsyncpa [#allocation5 + $0x1], 0  ;;  %s859_s12 = smov 0   ;;  %s861_s13 = smov 0  }
   0x4   :  { %s863_s14 = smov 0   ;;  %s865_s15 = smov 0  }
   0x5 LB: > { %s880_s16 = sadd.s32 4294967295, %s828_s15   ;;  %s608_s17 = sadd.s32 4294967294, %s828_s15   ;;  %s828_s15 = sphi %s865_s15, %s1055_s15   ;;  %s824_s14 = sphi %s863_s14, %s1054_s14   ;;  %s820_s13 = sphi %s861_s13, %s1053_s13   ;;  %s816_s12 = sphi %s859_s12, %s1052_s12  }
   0x6   : > { %s884_s18 = sadd.s32 1, %s828_s15   ;;  %s26_s19 = sadd.s32 1, %s824_s14 }
   0x7   : > { %s23_s20 = ssub.s32 %s828_s15, %s884_s18  ;;  %p33_p0 = scmp.ne.s32.totalorder %s824_s14, %s820_s13 }
   0x8   : > { %p24_p1 = scmp.eq.s32.totalorder %s23_s20, 0  ;;  %p34_p2 = scmp.eq.s32.totalorder %s828_s15, 0 }
   0x9   : > { %p39_p3 = scmp.ne.s32.totalorder %s820_s13, %s816_s12  ;;  %p40_p4 = scmp.eq.s32.totalorder %s880_s16, 0 }
   0xa   : > { %s896_s21 = scalar_select %p24_p1, %s824_s14, %s26_s19  }
   0xb   : > { %p898_p5 = por %p34_p2, %p33_p0  ;;  %p902_p6 = por %p40_p4, %p39_p3 }
   0xc   : > { %p105_p7 = scmp.eq.s32.totalorder %s880_s16, 3  ;;  %p111_p8 = scmp.eq.s32.totalorder %s608_s17, 3 }
   0xd   : > { %p691_p9 = scmp.lt.s32.totalorder %s828_s15, 4  ;;  %s137_s26 = sand.u32 1, %s824_s14  }
   0xe   : > { %p908_p10 = por %p105_p7, %p33_p0  ;;  %p912_p11 = por %p111_p8, %p39_p3 }
   0xf   : > { %s631_s27 = sshll.u32 %s828_s15, 9  ;;  %s611_s28 = sshll.u32 %s137_s26, 5 }
  0x10   : > { %s1047_s24 = scalar_select %p908_p10, 1, 0 }
  0x11   : > { %s1048_s25 = scalar_select %p912_p11, 1, 0 }
  0x12   : > { %s921_s4 = scalar_lea.hbm %s1040_s0, %s631_s27  ;;  %s141_s5 = scalar_lea.vmem [#allocation3], %s611_s28 }
  0x13   : > { %s149_s6 = sshll.u32 %s141_s5, 4  ;;  %p925_p12 = pnand %p691_p9, %p898_p5  ;;  %s929_s6 = int_to_ptr.vmem [resolvable:$true] %s149_s6 }
  0x14   : > { %s931_s8 = scalar_lea.sflag [#allocation4], %s137_s26  ;;  %s732_s9 = scalar_lea.hbm %s921_s4, 512 }
  0x15   : > { %p733_p13 = scmp.ne.s32.totalorder %s921_s4, %s732_s9  ;;  %p734_p0 = pneg %p925_p12 }
  0x16   : > { %s737_s17 = scalar_lea.hbm %s1040_s0, 2048  ;;  %p738_p3 = scmp.lt.u32.totalorder %s921_s4, %s1040_s0 }
  0x17   : > { %p735_p1 = pnand %p734_p0, %p733_p13  ;;  %p739_p4 = scmp.lt.u32.totalorder %s737_s17, %s732_s9 }
  0x18   : > { %p741_p7 = scmp.lt.u32.totalorder %s732_s9, %s921_s4 }
  0x19   : > { %p736_p2 = pneg %p735_p1  ;;  %p740_p5 = por %p739_p4, %p738_p3 }
  0x1b   : > { %p742_p8 = por %p741_p7, %p740_p5 }
  0x1d   : > { %p743_p9 = pnand %p742_p8, %p736_p2 }
  0x1f   : > { %746 = shalt.err (!%p743_p9)
}
  0x20   : > { %s747_s22 = scalar_lea.vmem %s929_s6, 512  ;;  %s830_s26 = smov [#allocation3]  }
  0x21   : > { %p748_p13 = scmp.ne.s32.totalorder %s929_s6, %s747_s22  ;;  %s752_s27 = sshll.u32 %s830_s26, 4  ;;  %s753_s27 = int_to_ptr.vmem [resolvable:$false] %s752_s27 }
  0x22   : > { %s754_s28 = scalar_lea.vmem %s753_s27, 1024  ;;  %p755_p10 = scmp.lt.s32.totalorder %s929_s6, %s753_s27 }
  0x23   : > { %p750_p1 = pnand %p748_p13, %p734_p0  ;;  %p756_p3 = scmp.lt.s32.totalorder %s754_s28, %s747_s22 }
  0x25   : > { %p751_p11 = pneg %p750_p1  ;;  %p757_p4 = por %p756_p3, %p755_p10 }
  0x27   : > { %p758_p5 = pnand %p757_p4, %p751_p11 }
  0x29   : > { %761 = shalt.err (!%p758_p5)
}
  0x2a   : > { %s831_s29 = smov 128   ;;  %s832_s30 = smov 8  }
  0x2b   : > { %686 = dma.hbm_to_vmem [thread:$0]  (!%p925_p12), %s921_s4, 512, %s929_s6, %s931_s8, %s831_s29, %s831_s29, %s832_s30  }
  0x2c   : > { %p615_p0 = scmp.ge.s32.totalorder %s828_s15, 1  ;;  %p157_p2 = scmp.lt.s32.totalorder %s828_s15, 5 }
  0x2e   : > { %p158_p7 = pnand %p615_p0, %p157_p2 }
  0x2f   : > { %s962_s5 = sand.u32 (!%p158_p7), 1, %s820_s13  }
  0x30   : > { %161 = sbr.rel (%p158_p7) target bundleno = 644 (0x284), region = 32  ;;  %s616_s9 = sshll.u32 (!%p158_p7), %s962_s5, 5 }
  0x31   : > { %s164_s10 = scalar_lea.sflag (!%p158_p7), [#allocation4], %s962_s5  ;;  %s167_s11 = scalar_lea.vmem (!%p158_p7), [#allocation3], %s616_s9 }
  0x37   : > { %807 = dma.done.wait (%p902_p6), %s164_s10, 512  }
  0x38   : > { %809 = vsyncadd (%p902_p6), %s164_s10, 4294966784  ;;  %vm198_vm0 = vcmask 130048   ;;  %v196_v0 = vld [vmem:[%s1041_s1] sm:$0xff]  ;;  %v197_v1 = vld [vmem:[%s1041_s1 + $0x8] sm:$0xff]  ;;  %v833_v9 = vmov 0.0|0.0   ;;  %vm834_vm1 = vmmov 0  }
  0x39   : > { %v192_v2 = vld [vmem:[%s167_s11] sm:$0xff]  ;;  %v669_v3 = vpack.c.bf16 %v197_v1, %v196_v0  ;;  %v193_v4 = vld [vmem:[%s167_s11 + $0x8] sm:$0xff]  ;;  %v194_v5 = vld [vmem:[%s167_s11 + $0x10] sm:$0xff]  ;;  %673 = vmatprep.subr.bf16.mxu1 %v833_v9  ;;  %v835_v11 = vmov 0.0   ;;  %vm296_vm2 = vcmask 64512   ;;  %s617_s22 = sshll.u32 %s962_s5, 4 }
  0x3a   : > { %649 = vmatprep.mubr.msk.f32.mxu0 %vm198_vm0, %v192_v2  ;;  %v195_v6 = vld [vmem:[%s167_s11 + $0x18] sm:$0xff]  ;;  %v301_v7 = vld [vmem:[%s1042_s2] sm:$0xff]  ;;  %v302_v8 = vld [vmem:[%s1042_s2 + $0x8] sm:$0xff]  ;;  %659 = vmatprep.mubr.msk.f32.mxu1 %vm834_vm1, %v835_v11  ;;  %s189_s26 = scalar_lea.vmem [#allocation6], %s617_s22  ;;  %s632_s28 = sshll.u32 %s880_s16, 8 }
  0x3b   : > { %670 = vmatprep.subr.bf16.mxu0 %v669_v3  ;;  %v674_v10 = vpack.c.bf16 %v302_v8, %v301_v7  ;;  %s535_s27 = sshll.u32 %s189_s26, 4  ;;  %s997_s9 = scalar_lea.hbm %s1043_s3, %s632_s28  ;;  %s992_s27 = int_to_ptr.vmem [resolvable:$true] %s535_s27 }
  0x3c   : > { %672 = vmatpush3.bf16.msra.mxu0 %v669_v3  ;;  %s522_s10 = scalar_lea.sflag [#allocation5], %s962_s5  ;;  %s762_s11 = scalar_lea.vmem %s992_s27, 256 }
  0x3d   : > { %675 = vmatpush3.bf16.msra.mxu1 %v674_v10  ;;  %p763_p6 = scmp.ne.s32.totalorder %s992_s27, %s762_s11  ;;  %p1050_p10 = scmp.ne.s32.totalorder %s1047_s24, 0 }
  0x3e   : > { %676 = vmatprep.subr.bf16.mxu1 %v833_v9  ;;  %s836_s16 = smov [#allocation6]  }
  0x3f   : > { %650 = vmatmul.mubr.msk.f32.vlgmr.msra.gmra.mrb[0].mxu0 %vm198_vm0, %v193_v4  ;;  %p764_p11 = pnand %p763_p6, %p1050_p10  ;;  %s766_s4 = sshll.u32 %s836_s16, 4  ;;  %s767_s4 = int_to_ptr.vmem [resolvable:$false] %s766_s4 }
  0x40   : > { %652 = vmatprep.mubr.msk.f32.mxu0 %vm198_vm0, %v194_v5  ;;  %s768_s6 = scalar_lea.vmem %s767_s4, 512  ;;  %p769_p8 = scmp.lt.s32.totalorder %s992_s27, %s767_s4 }
  0x41   : > { %p765_p12 = pneg %p764_p11  ;;  %p770_p9 = scmp.lt.s32.totalorder %s768_s6, %s762_s11 }
  0x43   : > { %653 = vmatmul.mubr.msk.f32.gmra.mrb[2].mxu0 %vm198_vm0, %v195_v6  ;;  %p771_p13 = por %p770_p9, %p769_p8 }
  0x45   : > { %p772_p1 = pnand %p771_p13, %p765_p12 }
 0x112   : > { %v651_v12 = vpop.f32.mrb[0].mxu0 }
 0x113   : > { %298 = vst.msk [vmem:[#allocation2 + $0x8] sm:$0xff] %vm296_vm2, %v651_v12  ;;  %v277_v13 = vpop.f32.mrb[1].mxu0 }
 0x114   : > { %297 = vst.msk [vmem:[#allocation2] sm:$0xff] %vm296_vm2, %v277_v13 }
 0x116   : > { %v654_v14 = vpop.f32.mrb[2].mxu0 }
 0x117   : > { %300 = vst.msk [vmem:[#allocation2 + $0x18] sm:$0xff] %vm296_vm2, %v654_v14  ;;  %v287_v15 = vpop.f32.mrb[3].mxu0 }
 0x118   : > { %299 = vst.msk [vmem:[#allocation2 + $0x10] sm:$0xff] %vm296_vm2, %v287_v15 }
 0x11a   : > { %v304_v17 = vld [vmem:[#allocation2 + $0x8] sm:$0xff] }
 0x11b   : > { %v303_v16 = vld [vmem:[#allocation2] sm:$0xff] }
 0x11c   : > { %305 = vxpose.xlu0.b32.start [1/2] (short) (narrow) %v303_v16, 8 }
 0x11e   : > { %v413_v19 = vld [vmem:[#allocation2 + $0x18] sm:$0xff] }
 0x11f   : > { %v412_v18 = vld [vmem:[#allocation2 + $0x10] sm:$0xff] }
 0x120   : > { %306 = vxpose.xlu0.b32.end [2/2] (short) (narrow) %v304_v17, 8  ;;  %414 = vxpose.xlu1.b32.start [1/2] (short) (narrow) %v412_v18, 8 }
 0x124   : > { %415 = vxpose.xlu1.b32.end [2/2] (short) (narrow) %v413_v19, 8 }
 0x19c   : > { %v321_v20 = vpop.trf.xlu0 }
 0x19d   : > { %660 = vmatmul.mubr.msk.f32.vlgmr.msra.gmra.mrb[0].mxu1 %vm198_vm0, %v321_v20 }
 0x19e   : > { %678 = vmatpush3.bf16.msra.mxu1 %v674_v10  ;;  %666 = vmatprep.mubr.msk.f32.mxu1 %vm834_vm1, %v835_v11 }
 0x1a0   : > { %v430_v21 = vpop.trf.xlu1 }
 0x1a1   : > { %667 = vmatmul.mubr.msk.f32.vlgmr.msra.gmra.mrb[2].mxu1 %vm198_vm0, %v430_v21 }
 0x270   : > { %v406_v22 = vpop.f32.mrb[0].mxu1 }
 0x271   : > { %410 = vst [vmem:[%s189_s26] sm:$0xff] %v406_v22  ;;  %v661_v23 = vpop.f32.mrb[1].mxu1 }
 0x274   : > { %v515_v24 = vpop.f32.mrb[2].mxu1 }
 0x275   : > { %624 = vst [vmem:[%s189_s26 + $0x8] sm:$0xff] %v515_v24  ;;  %v668_v25 = vpop.f32.mrb[3].mxu1 }
 0x276   : > { %775 = shalt.err (!%p772_p1)
}
 0x277   : > { %s776_s7 = scalar_lea.hbm %s997_s9, 256  ;;  %s780_s17 = scalar_lea.hbm %s1043_s3, 1024 }
 0x278   : > { %p777_p3 = scmp.ne.s32.totalorder %s997_s9, %s776_s7  ;;  %p781_p0 = scmp.lt.u32.totalorder %s997_s9, %s1043_s3 }
 0x279   : > { %p782_p2 = scmp.lt.u32.totalorder %s780_s17, %s776_s7  ;;  %p784_p6 = scmp.lt.u32.totalorder %s776_s7, %s997_s9 }
 0x27a   : > { %p778_p4 = pnand %p777_p3, %p1050_p10 }
 0x27b   : > { %p783_p7 = por %p782_p2, %p781_p0 }
 0x27c   : > { %p779_p5 = pneg %p778_p4 }
 0x27d   : > { %p785_p11 = por %p784_p6, %p783_p7 }
 0x27f   : > { %p786_p12 = pnand %p785_p11, %p779_p5 }
 0x281   : > { %789 = shalt.err (!%p786_p12)
}
 0x282   : > { %s837_s22 = smov 128   ;;  %s838_s26 = smov 8  }
 0x283   : > { %681 = dma.vmem_to_hbm [thread:$0]  (%p1050_p10), %s992_s27, 256, %s997_s9, %s522_s10, %s837_s22, %s837_s22, %s838_s26  }
 0x284 PF: > { %p692_p8 = scmp.ge.s32.totalorder %s828_s15, 2  ;;  %s550_s28 = sand.u32 1, %s816_s12  }
 0x285   : > { %p1051_p9 = scmp.ne.s32.totalorder %s1048_s25, 0  ;;  %s551_s29 = scalar_lea.sflag [#allocation5], %s550_s28 }
 0x287   : > { %p688_p13 = pnand %p692_p8, %p1051_p9 }
 0x289   : > { %811 = dma.done.wait (!%p688_p13), %s551_s29, 256  }
 0x28a   : > { %813 = vsyncadd (!%p688_p13), %s551_s29, 4294967040  ;;  %p16_p1 = scmp.ge.s32.totalorder %s884_s18, 6   ;;  %s1052_s12 = smov %s820_s13 }
 0x28b   : > { %s1053_s13 = smov %s824_s14  ;;  %s1054_s14 = smov %s896_s21 }
 0x28c   : > { %s1055_s15 = smov %s884_s18  ;;  %18 = sbr.rel (!%p16_p1) target bundleno = 5 (0x5), region = 79 }
 0x293   :  { %556 = vsyncpa [#allocation4], 1 }
 0x294   :  { %558 = vsyncpa [#allocation4 + $0x1], 1 }
 0x295   :  { %559 = vsyncpa [#allocation5], 1 }
 0x296   :  { %561 = vsyncpa [#allocation5 + $0x1], 1 }

</bundles_post_ra>
